<compile_context>
chip_gen: v7x
topology: tpu7x:2x2x1
jax: 0.10.0
libtpu: 0.0.40
codegen_flags: <defaults>
</compile_context>

<pallas_src>
import functools

import jax
import jax.numpy as jnp
from jax.experimental import pallas as pl
from jax.experimental.pallas import tpu as pltpu


def _round_up(x, m):
    return (x + m - 1) // m * m


def _cdiv(a, b):
    return (a + b - 1) // b


def _compress_kernel(x_ref, w1_ref, b1_ref, w2_ref, b2_ref, o_ref, *,
                     t_inner, compute_dtype):
    """One (batch, pixel-tile) step through both 1x1 conv layers.

    x_ref : (C, T)    channel-major pixel tile (batch dim squeezed)
    w1_ref: (Cm, C)   conv1 weight with BN scale folded in
    b1_ref: (Cm, 1)   conv1 bias + BN shift (folded)
    w2_ref: (Cm, 1)   conv2 weight as a column -> VPU weighted reduction
    b2_ref: (1, 1)    conv2 bias
    o_ref : (1, T)
    """
    w1 = w1_ref[...].astype(compute_dtype)       # (Cm, C)
    b1 = b1_ref[...]                              # (Cm, 1) f32
    w2 = w2_ref[...]                              # (Cm, 1) f32
    b2 = b2_ref[...]                              # (1, 1)  f32

    tile = x_ref.shape[-1]
    n_inner = tile // t_inner

    def chunk(off):
        xc = x_ref[:, pl.ds(off, t_inner)].astype(compute_dtype)     # (C, Ti)
        # Layer 1 on the MXU (keep this orientation: K=C on sublanes).
        h = jnp.dot(w1, xc, preferred_element_type=jnp.float32)      # (Cm, Ti)
        h = jnp.maximum(h + b1, 0.0)
        # Layer 2: broadcast-mul + sublane sum (VPU/XLU); vmatmul slot stays free.
        y = jnp.sum(w2 * h, axis=0, keepdims=True) + b2              # (1, Ti)
        o_ref[:, pl.ds(off, t_inner)] = jnp.maximum(y, 0.0).astype(o_ref.dtype)

    if n_inner <= 8:
        # Short trip count: unroll statically.
        for i in range(n_inner):
            chunk(i * t_inner)
    else:
        @pl.loop(0, n_inner)
        def _(i):
            chunk(pl.multiple_of(i * t_inner, 128))


def _pick_tiles(hw, c_in, x_itemsize, n_batch, *,
                vmem_budget_bytes=20 << 20, max_tile=131072):
    """Pick (tile_hw, t_inner).

    tile_hw: lane-dense DMA tile, as large as the VMEM budget / max_tile allow
             so each grid step streams ~MiBs of HBM.
    t_inner: inner lane chunk that keeps the (c_mid, t_inner) f32 intermediate
             vreg-resident (no VMEM spill of the activation).
    """
    hw_lane = _round_up(hw, 128)
    # Per lane column: double-buffered x block + double-buffered f32 out block.
    bytes_per_col = 2 * c_in * x_itemsize + 2 * 4
    cap = max(128, (vmem_budget_bytes // bytes_per_col) // 128 * 128)
    tile = min(hw_lane, max_tile, cap)
    # v7x megacore: keep >= 2 grid steps when possible so both TCs get work.
    if n_batch * _cdiv(hw_lane, tile) < 2 and tile > 128:
        tile = _round_up(_cdiv(hw_lane, 2), 128)
    t_inner = 256
    while tile % t_inner:
        t_inner //= 2
    return tile, t_inner


def compress_net_forward(x_nchw, folded_params, *, tile_hw=None,
                         compute_dtype=jnp.bfloat16):
    """CompressNet forward. x_nchw: (N, C, H, W) -> (N, 1, H, W) float32.

    compute_dtype controls matmul input precision (accumulation is always f32).
    Pass compute_dtype=jnp.float32 for bit-accurate PyTorch eval-mode numerics.
    x may be float32 or bfloat16 in HBM; bf16 input halves HBM read traffic.
    """
    w1, b1, w2, b2 = folded_params
    N, C, H, W = x_nchw.shape
    HW = H * W
    c_mid = w1.shape[0]

    # Channel-major view: a free reshape, no transpose / extra HBM pass.
    xm = x_nchw.reshape(N, C, HW)

    picked_tile, t_inner = _pick_tiles(HW, C, xm.dtype.itemsize, N)
    if tile_hw is None:
        tile_hw = picked_tile
    else:
        tile_hw = _round_up(int(tile_hw), 128)
        t_inner = 256
        while tile_hw % t_inner:
            t_inner //= 2

    HW_pad = _round_up(HW, tile_hw)
    if HW_pad != HW:
        xm = jnp.pad(xm, ((0, 0), (0, 0), (0, HW_pad - HW)))

    grid = (N, HW_pad // tile_hw)

    # Explicit VMEM accounting: double-buffered x/out blocks + params + headroom.
    block_bytes = (2 * C * tile_hw * xm.dtype.itemsize
                   + 2 * tile_hw * 4
                   + 2 * 4 * (c_mid * C + 2 * c_mid + 1))
    vmem_limit = int(min(max(block_bytes + (4 << 20), 16 << 20), 30 << 20))

    # Parameters are tiny 2-D arrays, kept fully resident in VMEM.
    def _param_spec(arr):
        return pl.BlockSpec(arr.shape, lambda n, j: (0, 0))

    kernel = functools.partial(_compress_kernel, t_inner=t_inner,
                               compute_dtype=compute_dtype)

    out = pl.pallas_call(
        kernel,
        out_shape=jax.ShapeDtypeStruct((N, 1, HW_pad), jnp.float32),
        grid_spec=pltpu.PrefetchScalarGridSpec(
            num_scalar_prefetch=0,
            grid=grid,
            in_specs=[
                # Batch dim squeezed out of the kernel view -> (C, tile_hw).
                pl.BlockSpec((None, C, tile_hw), lambda n, j: (n, 0, j)),
                _param_spec(w1), _param_spec(b1),
                _param_spec(w2), _param_spec(b2),
            ],
            # (1, tile_hw): lane-dense output block -> unmasked stores.
            out_specs=pl.BlockSpec((None, 1, tile_hw), lambda n, j: (n, 0, j)),
        ),
        compiler_params=pltpu.CompilerParams(
            dimension_semantics=("parallel", "parallel"),
            vmem_limit_bytes=vmem_limit),
    )(xm, w1, b1, w2, b2)

    # Padded pixels compute relu(w2 . relu(b1') + b2) != 0; slice them off
    # before anything downstream can observe them.
    out = out[:, :, :HW]
    return out.reshape(N, 1, H, W)


def init_raw_params(key, channel, c_mid=64):
    """Deterministic PyTorch-style parameters: conv weights/biases + BN stats."""
    ks = jax.random.split(key, 8)
    w1 = jax.random.normal(ks[0], (c_mid, channel), jnp.float32) * 0.1
    cb1 = jax.random.normal(ks[1], (c_mid,), jnp.float32) * 0.1
    gamma = 1.0 + 0.1 * jax.random.normal(ks[2], (c_mid,), jnp.float32)
    beta = 0.1 * jax.random.normal(ks[3], (c_mid,), jnp.float32)
    rmean = 0.1 * jax.random.normal(ks[4], (c_mid,), jnp.float32)
    rvar = 1.0 + 0.5 * jax.random.uniform(ks[5], (c_mid,), jnp.float32)
    w2 = jax.random.normal(ks[6], (1, c_mid), jnp.float32) * 0.1
    cb2 = jax.random.normal(ks[7], (1,), jnp.float32) * 0.1
    return w1, cb1, gamma, beta, rmean, rvar, w2, cb2


def fold_params(raw, eps=1e-5):
    """Fold eval-mode BatchNorm (scale & shift) into conv1's weight and bias."""
    w1, cb1, gamma, beta, rmean, rvar, w2, cb2 = raw
    scale = gamma / jnp.sqrt(rvar + eps)             # (Cm,)
    w1f = w1 * scale[:, None]                        # (Cm, C)
    b1f = ((cb1 - rmean) * scale + beta)[:, None]    # (Cm, 1)
    w2f = w2.T                                       # (Cm, 1) column for VPU reduce
    b2f = cb2[:, None]                               # (1, 1)
    return w1f, b1f, w2f, b2f


def _reference(x, raw, eps=1e-5):
    """Plain-JAX reference mirroring the PyTorch forward (BN in eval mode)."""
    w1, cb1, gamma, beta, rmean, rvar, w2, cb2 = raw
    y = jnp.einsum('oc,nchw->nohw', w1, x) + cb1[None, :, None, None]
    y = (y - rmean[None, :, None, None]) * (
        gamma / jnp.sqrt(rvar + eps))[None, :, None, None] \
        + beta[None, :, None, None]
    y = jnp.maximum(y, 0.0)
    z = jnp.einsum('po,nohw->nphw', w2, y) + cb2[None, :, None, None]
    return jnp.maximum(z, 0.0)


if __name__ == "__main__":
    key = jax.random.PRNGKey(0)
    k_x, k_p = jax.random.split(key)

    N, C, H, W = 2, 4, 16, 16
    x = jax.random.normal(k_x, (N, C, H, W), jnp.float32)
    raw = init_raw_params(k_p, C)
    params = fold_params(raw)
    ref = _reference(x, raw)

    # f32-compute path: matches PyTorch eval-mode numerics tightly.
    fwd_f32 = jax.jit(functools.partial(compress_net_forward,
                                        compute_dtype=jnp.float32))
    out_f32 = jax.block_until_ready(fwd_f32(x, params))
    assert out_f32.shape == (N, 1, H, W), out_f32.shape
    err_f32 = float(jnp.max(jnp.abs(out_f32 - ref)))
    assert err_f32 < 1e-4, err_f32

    # Default fast path: bf16 matmul inputs, f32 accumulation.
    fwd = jax.jit(compress_net_forward)
    out = jax.block_until_ready(fwd(x, params))
    assert out.shape == (N, 1, H, W), out.shape
    err = float(jnp.max(jnp.abs(out - ref)))
    assert err < 5e-2, err

    print("KERNEL_OK")
</pallas_src>

<mosaic_0001>
module attributes {stable_mosaic.version = 11 : i64} {
  func.func @_compress_kernel(%arg0: i32, %arg1: i32, %arg2: memref<1x4x256xf32, #tpu.memory_space<vmem>>, %arg3: memref<64x4xf32, #tpu.memory_space<vmem>>, %arg4: memref<64x1xf32, #tpu.memory_space<vmem>>, %arg5: memref<64x1xf32, #tpu.memory_space<vmem>>, %arg6: memref<1x1xf32, #tpu.memory_space<vmem>>, %arg7: memref<1x1x256xf32, #tpu.memory_space<vmem>>) attributes {dimension_semantics = [#tpu.dimension_semantics<parallel>, #tpu.dimension_semantics<parallel>], iteration_bounds = array<i64: 2, 1>, scalar_prefetch = 0 : i64, scratch_operands = 0 : i64, tpu.core_type = #tpu.core_type<tc>, window_params = [{transform_indices = @transform_0, window_bounds = array<i64: 1, 4, 256>}, {pipeline_mode = #tpu.pipeline_mode<synchronous>, transform_indices = @transform_1, window_bounds = array<i64: 64, 4>}, {pipeline_mode = #tpu.pipeline_mode<synchronous>, transform_indices = @transform_2, window_bounds = array<i64: 64, 1>}, {pipeline_mode = #tpu.pipeline_mode<synchronous>, transform_indices = @transform_3, window_bounds = array<i64: 64, 1>}, {pipeline_mode = #tpu.pipeline_mode<synchronous>, transform_indices = @transform_4, window_bounds = array<i64: 1, 1>}, {transform_indices = @transform_5, window_bounds = array<i64: 1, 1, 256>}]} {
    %c0 = arith.constant 0 : index
    %c0_0 = arith.constant 0 : index
    %0 = vector.load %arg3[%c0, %c0_0] : memref<64x4xf32, #tpu.memory_space<vmem>>, vector<64x4xf32>
    %c0_1 = arith.constant 0 : index
    %c0_2 = arith.constant 0 : index
    %1 = vector.load %arg4[%c0_1, %c0_2] : memref<64x1xf32, #tpu.memory_space<vmem>>, vector<64x1xf32>
    %c0_3 = arith.constant 0 : index
    %c0_4 = arith.constant 0 : index
    %2 = vector.load %arg5[%c0_3, %c0_4] : memref<64x1xf32, #tpu.memory_space<vmem>>, vector<64x1xf32>
    %c0_5 = arith.constant 0 : index
    %c0_6 = arith.constant 0 : index
    %3 = vector.load %arg6[%c0_5, %c0_6] : memref<1x1xf32, #tpu.memory_space<vmem>>, vector<1x1xf32>
    %c0_7 = arith.constant 0 : index
    %c0_8 = arith.constant 0 : index
    %c0_9 = arith.constant 0 : index
    %4 = vector.load %arg2[%c0_7, %c0_8, %c0_9] : memref<1x4x256xf32, #tpu.memory_space<vmem>>, vector<1x4x256xf32>
    %5 = vector.shape_cast %4 : vector<1x4x256xf32> to vector<4x256xf32>
    %cst = arith.constant dense<0.000000e+00> : vector<64x256xf32>
    %6 = tpu.matmul %0, %5, %cst {dimension_numbers = #tpu.dot_dimension_numbers<[1], [0], [0], [1], [0, 0, 1, 1], [], []>} : vector<64x4xf32>, vector<4x256xf32>, vector<64x256xf32> -> vector<64x256xf32>
    %7 = vector.broadcast %1 : vector<64x1xf32> to vector<64x256xf32>
    %8 = arith.addf %6, %7 : vector<64x256xf32>
    %cst_10 = arith.constant 0.000000e+00 : f32
    %9 = vector.broadcast %cst_10 : f32 to vector<64x256xf32>
    %10 = arith.maximumf %8, %9 : vector<64x256xf32>
    %11 = vector.broadcast %2 : vector<64x1xf32> to vector<64x256xf32>
    %12 = arith.mulf %11, %10 : vector<64x256xf32>
    %cst_11 = arith.constant dense<0.000000e+00> : vector<256xf32>
    %13 = vector.multi_reduction <add>, %12, %cst_11 [0] : vector<64x256xf32> to vector<256xf32>
    %14 = vector.shape_cast %13 : vector<256xf32> to vector<1x256xf32>
    %15 = vector.broadcast %3 : vector<1x1xf32> to vector<1x256xf32>
    %16 = arith.addf %14, %15 : vector<1x256xf32>
    %cst_12 = arith.constant 0.000000e+00 : f32
    %17 = vector.broadcast %cst_12 : f32 to vector<1x256xf32>
    %18 = arith.maximumf %16, %17 : vector<1x256xf32>
    %c0_13 = arith.constant 0 : index
    %c0_14 = arith.constant 0 : index
    %c0_15 = arith.constant 0 : index
    %19 = vector.load %arg7[%c0_13, %c0_14, %c0_15] : memref<1x1x256xf32, #tpu.memory_space<vmem>>, vector<1x1x256xf32>
    %20 = vector.shape_cast %19 : vector<1x1x256xf32> to vector<1x256xf32>
    %21 = vector.shape_cast %18 : vector<1x256xf32> to vector<1x1x256xf32>
    tpu.vector_store %arg7[%c0_13, %c0_14, %c0_15], %21 {strides = array<i32>} : memref<1x1x256xf32, #tpu.memory_space<vmem>>, vector<1x1x256xf32>,
    return
  }
  func.func @transform_0(%arg0: i32, %arg1: i32) -> (i32, i32, i32) {
    %c0_i32 = arith.constant 0 : i32
    %c0_i32_0 = arith.constant 0 : i32
    return %arg0, %c0_i32, %arg1 : i32, i32, i32
  }
  func.func @transform_1(%arg0: i32, %arg1: i32) -> (i32, i32) {
    %c0_i32 = arith.constant 0 : i32
    %c0_i32_0 = arith.constant 0 : i32
    %c0_i32_1 = arith.constant 0 : i32
    return %c0_i32, %c0_i32_0 : i32, i32
  }
  func.func @transform_2(%arg0: i32, %arg1: i32) -> (i32, i32) {
    %c0_i32 = arith.constant 0 : i32
    %c0_i32_0 = arith.constant 0 : i32
    %c0_i32_1 = arith.constant 0 : i32
    return %c0_i32, %c0_i32_0 : i32, i32
  }
  func.func @transform_3(%arg0: i32, %arg1: i32) -> (i32, i32) {
    %c0_i32 = arith.constant 0 : i32
    %c0_i32_0 = arith.constant 0 : i32
    %c0_i32_1 = arith.constant 0 : i32
    return %c0_i32, %c0_i32_0 : i32, i32
  }
  func.func @transform_4(%arg0: i32, %arg1: i32) -> (i32, i32) {
    %c0_i32 = arith.constant 0 : i32
    %c0_i32_0 = arith.constant 0 : i32
    %c0_i32_1 = arith.constant 0 : i32
    return %c0_i32, %c0_i32_0 : i32, i32
  }
  func.func @transform_5(%arg0: i32, %arg1: i32) -> (i32, i32, i32) {
    %c0_i32 = arith.constant 0 : i32
    %c0_i32_0 = arith.constant 0 : i32
    return %arg0, %c0_i32, %arg1 : i32, i32, i32
  }
}

</mosaic_0001>

<bundles_post_ra>
// kernel: compress_net_forward.1
= control target key start
LH: loop header
LB: loop body
LE: loop exit
PB: predicated region body
PF: predicated region fallthrough
CT: control target
= control target key end

     0   :  { %s803_s20 = smov 0   ;;  %s805_s21 = smov 0   ;;  %s920_s0 = inlined_call_operand.vmem [shape: f32[2,4,256], index: 0, kind: input, shape index: {}]   ;;  %s921_s1 = inlined_call_operand.vmem [shape: f32[64,4], index: 1, kind: input, shape index: {}]   ;;  %s922_s2 = inlined_call_operand.vmem [shape: f32[64,1], index: 2, kind: input, shape index: {}]   ;;  %s923_s3 = inlined_call_operand.vmem [shape: f32[64,1], index: 3, kind: input, shape index: {}]   ;;  %s924_s4 = inlined_call_operand.<no memory space> [shape: f32[1,1], index: 4, kind: input, shape index: {}]   ;;  %s925_s5 = inlined_call_operand.vmem [shape: f32[2,1,256], index: 5, kind: output, shape index: {}]  }
   0x1   :  { %v10_v0 = vstv %s924_s4  ;;  %s807_s22 = smov 0  }
   0x2   :  { %11 = vst [vmem:[#allocation2] sm:$0x1] %v10_v0 }
   0x3 LB: > { %s29_s4 = sadd.s32 1, %s761_s21  ;;  %p694_p0 = scmp.ge.s32.totalorder %s765_s22, 1  ;;  %s765_s22 = sphi %s807_s22, %s17_s22   ;;  %s761_s21 = sphi %s805_s21, %s927_s21   ;;  %s757_s20 = sphi %s803_s20, %s926_s20  }
   0x4   : > { %p31_p1 = scmp.ge.s32.totalorder %s29_s4, 2  ;;  %p210_p2 = scmp.lt.s32.totalorder %s765_s22, 3 }
   0x6   : > { %s929_s4 = smov (%p31_p1, %s29_s4), 0  ;;  %p211_p3 = pnand %p694_p0, %p210_p2 }
   0x7   : > { %p246_p4 = scmp.lt.s32.totalorder (!%p211_p3), %s757_s20, 1  ;;  %v767_v1 = vmov (!%p211_p3), 0.0   ;;  %v768_v2 = vmov (!%p211_p3), 0   ;;  %v272_v3 = vld [vmem:[%s922_s2] sm:$0xff] (!%p211_p3)  ;;  %v274_v4 = vld [vmem:[%s922_s2 + $0x10] sm:$0xff] (!%p211_p3)  ;;  %v273_v5 = vld [vmem:[%s922_s2 + $0x8] sm:$0xff] (!%p211_p3) }
   0x8   : > { %214 = sbr.rel (%p211_p3) target bundleno = 287 (0x11f), region = 40  ;;  %426 = vmatprep.mubr.f32.mxu0 (!%p211_p3), %v767_v1  ;;  %450 = vmatprep.mubr.f32.mxu1 (!%p211_p3), %v767_v1  ;;  %v275_v6 = vld [vmem:[%s922_s2 + $0x18] sm:$0xff] (!%p211_p3)  ;;  %vm357_vm0 = vcmask (!%p211_p3), 1043456   ;;  %v264_v9 = vld [vmem:[%s921_s1] sm:$0xff] (!%p211_p3)  ;;  %vm332_vm1 = vcmask (!%p211_p3), 31744   ;;  %v281_v12 = vld [vmem:[%s923_s3 + $0x8] sm:$0xff] (!%p211_p3) }
   0x9   : > { %740 = vset.pattern.permute.xlu0 (!%p211_p3), %v768_v2  ;;  %741 = vset.pattern.permute.xlu1 (!%p211_p3), %v768_v2  ;;  %v268_v10 = vld [vmem:[%s921_s1 + $0x20] sm:$0xff] (!%p211_p3)  ;;  %v265_v13 = vld [vmem:[%s921_s1 + $0x8] sm:$0xff] (!%p211_p3)  ;;  %v282_v16 = vld [vmem:[%s923_s3 + $0x10] sm:$0xff] (!%p211_p3) }
   0xa   : > { %292 = vperm.xlu0 (!%p211_p3), %740, %v272_v3   ;;  %302 = vperm.xlu1 (!%p211_p3), %741, %v274_v4   ;;  %v280_v11 = vld [vmem:[%s923_s3] sm:$0xff] (!%p211_p3)  ;;  %v269_v14 = vld [vmem:[%s921_s1 + $0x28] sm:$0xff] (!%p211_p3)  ;;  %v266_v17 = vld [vmem:[%s921_s1 + $0x10] sm:$0xff] (!%p211_p3) }
   0xb   : > { %v276_v15 = vld [vmem:[%s922_s2 + $0x20] sm:$0xff] (!%p211_p3)  ;;  %v270_v18 = vld [vmem:[%s921_s1 + $0x30] sm:$0xff] (!%p211_p3)  ;;  %v277_v19 = vld [vmem:[%s922_s2 + $0x28] sm:$0xff] (!%p211_p3) }
   0xc   : > { %v283_v20 = vld [vmem:[%s923_s3 + $0x18] sm:$0xff] (!%p211_p3)  ;;  %v278_v23 = vld [vmem:[%s922_s2 + $0x30] sm:$0xff] (!%p211_p3)  ;;  %v284_v24 = vld [vmem:[%s923_s3 + $0x20] sm:$0xff] (!%p211_p3) }
   0xd   : > { %v267_v21 = vld [vmem:[%s921_s1 + $0x18] sm:$0xff] (!%p211_p3)  ;;  %v285_v26 = vld [vmem:[%s923_s3 + $0x28] sm:$0xff] (!%p211_p3)  ;;  %v286_v27 = vld [vmem:[%s923_s3 + $0x30] sm:$0xff] (!%p211_p3) }
   0xe   : > { %297 = vperm.xlu0 (!%p211_p3), %740, %v273_v5   ;;  %307 = vperm.xlu1 (!%p211_p3), %741, %v275_v6   ;;  %v271_v22 = vld [vmem:[%s921_s1 + $0x38] sm:$0xff] (!%p211_p3)  ;;  %v288_v29 = vld [vmem:[#allocation2] sm:$0x1] (!%p211_p3) }
   0xf   : > { %s931_s20 = smov (!%p246_p4, %s757_s20), 1  ;;  %v279_v25 = vld [vmem:[%s922_s2 + $0x38] sm:$0xff] }
  0x10   : > { %s710_s27 = sshll.u32 %s931_s20, 3  ;;  %v287_v28 = vld [vmem:[%s923_s3 + $0x38] sm:$0xff]  ;;  %s697_s6 = sshll.u32 %s931_s20, 1 }
  0x11   : > { %s253_s30 = scalar_lea.vmem %s920_s0, %s710_s27  ;;  %s262_s9 = scalar_lea.vmem %s925_s5, %s697_s6 }
  0x12   : > { %v289_v7 = vld [vmem:[%s253_s30] sm:$0xff]  ;;  %493 = vperm.xlu0 %740, %v280_v11   ;;  %498 = vperm.xlu1 %741, %v281_v12  }
  0x13   : > { %v331_v8 = vcombine.high %v289_v7, %v289_v7 }
  0x15   : > { %698 = vmatprep.subr.msk.mxu0 %vm357_vm0, %v331_v8  ;;  %711 = vmatprep.subr.msk.mxu1 %vm357_vm0, %v331_v8 }
  0x16   : > { %699 = vmatpush1.msk.msra.mxu0 %vm357_vm0, %v289_v7  ;;  %712 = vmatpush1.msk.msra.mxu1 %vm357_vm0, %v289_v7 }
  0x17   : > { %700 = vmatmul.mubr.msk.f32.vlgmr.msra.gmra.mrb[0].mxu0 %vm332_vm1, %v264_v9  ;;  %704 = vmatmul.mubr.msk.f32.vlgmr.msra.gmra.mrb[0].mxu1 %vm332_vm1, %v268_v10 }
  0x18   : > { %432 = vmatprep.mubr.f32.mxu0 %v767_v1  ;;  %456 = vmatprep.mubr.f32.mxu1 %v767_v1 }
  0x19   : > { %312 = vperm.xlu0 %740, %v276_v15   ;;  %503 = vperm.xlu1 %741, %v282_v16  }
  0x1b   : > { %701 = vmatmul.mubr.msk.f32.gmra.mrb[2].mxu0 %vm332_vm1, %v265_v13  ;;  %705 = vmatmul.mubr.msk.f32.gmra.mrb[2].mxu1 %vm332_vm1, %v269_v14 }
  0x1c   : > { %438 = vmatprep.mubr.f32.mxu0 %v767_v1  ;;  %462 = vmatprep.mubr.f32.mxu1 %v767_v1 }
  0x1d   : > { %317 = vperm.xlu0 %740, %v277_v19   ;;  %508 = vperm.xlu1 %741, %v283_v20  }
  0x1f   : > { %702 = vmatmul.mubr.msk.f32.gmra.mrb[4].mxu0 %vm332_vm1, %v266_v17  ;;  %706 = vmatmul.mubr.msk.f32.gmra.mrb[4].mxu1 %vm332_vm1, %v270_v18 }
  0x20   : > { %444 = vmatprep.mubr.f32.mxu0 %v767_v1  ;;  %468 = vmatprep.mubr.f32.mxu1 %v767_v1 }
  0x21   : > { %322 = vperm.xlu0 %740, %v278_v23   ;;  %513 = vperm.xlu1 %741, %v284_v24  }
  0x23   : > { %703 = vmatmul.mubr.msk.f32.gmra.mrb[6].mxu0 %vm332_vm1, %v267_v21  ;;  %707 = vmatmul.mubr.msk.f32.gmra.mrb[6].mxu1 %vm332_vm1, %v271_v22 }
  0x25   : > { %327 = vperm.xlu0 %740, %v279_v25   ;;  %518 = vperm.xlu1 %741, %v285_v26  }
  0x29   : > { %523 = vperm.xlu0 %740, %v286_v27   ;;  %528 = vperm.xlu1 %741, %v287_v28  }
  0x2d   : > { %575 = vperm.xlu0 %740, %v288_v29  }
  0x89   : > { %v293_v30 = vpop.permute.xlu0 %292  ;;  %v303_v31 = vpop.permute.xlu1 %302 }
  0x8d   : > { %v298_v32 = vpop.permute.xlu0 %297  ;;  %v308_v33 = vpop.permute.xlu1 %307 }
  0x91   : > { %v494_v34 = vpop.permute.xlu0 %493  ;;  %v499_v35 = vpop.permute.xlu1 %498 }
  0x98   : > { %v313_v36 = vpop.permute.xlu0 %312  ;;  %v504_v37 = vpop.permute.xlu1 %503 }
  0x9c   : > { %v318_v44 = vpop.permute.xlu0 %317  ;;  %v509_v45 = vpop.permute.xlu1 %508 }
  0xa0   : > { %v323_v63 = vpop.permute.xlu0 %322  ;;  %v514_v3 = vpop.permute.xlu1 %513 }
  0xa4   : > { %v328_v24 = vpop.permute.xlu0 %327 }
  0xea   : > { %v428_v38 = vpop.f32.mrb[0].mxu0  ;;  %v452_v39 = vpop.f32.mrb[0].mxu1 }
  0xeb   : > { %v429_v40 = vadd.f32 %v428_v38, %v293_v30  ;;  %v430_v41 = vpop.f32.mrb[1].mxu0  ;;  %v454_v42 = vpop.f32.mrb[1].mxu1  ;;  %v453_v4 = vadd.f32 %v452_v39, %v313_v36 }
  0xec   : > { %v431_v43 = vadd.f32 %v430_v41, %v293_v30  ;;  %v455_v7 = vadd.f32 %v454_v42, %v313_v36 }
  0xed   : > { %v475_v48 = vmax.f32 %v429_v40, 0.0  ;;  %v483_v20 = vmax.f32 %v453_v4, 0.0 }
  0xee   : > { %v434_v46 = vpop.f32.mrb[2].mxu0  ;;  %v458_v47 = vpop.f32.mrb[2].mxu1  ;;  %v476_v52 = vmax.f32 %v431_v43, 0.0  ;;  %v484_v25 = vmax.f32 %v455_v7, 0.0 }
  0xef   : > { %v435_v49 = vadd.f32 %v434_v46, %v298_v32  ;;  %v436_v50 = vpop.f32.mrb[3].mxu0  ;;  %v460_v51 = vpop.f32.mrb[3].mxu1  ;;  %v531_v58 = vmul.f32 %v494_v34, %v475_v48  ;;  %v459_v12 = vadd.f32 %v458_v47, %v318_v44  ;;  %v539_v38 = vmul.f32 %v514_v3, %v483_v20 }
  0xf0   : > { %v437_v53 = vadd.f32 %v436_v50, %v298_v32  ;;  %v532_v0 = vmul.f32 %v494_v34, %v476_v52  ;;  %v461_v17 = vadd.f32 %v460_v51, %v318_v44  ;;  %v519_v32 = vpop.permute.xlu1 %518  ;;  %v524_v46 = vpop.permute.xlu0 %523 }
  0xf1   : > { %v477_v54 = vmax.f32 %v435_v49, 0.0  ;;  %v485_v29 = vmax.f32 %v459_v12, 0.0 }
  0xf2   : > { %v478_v55 = vmax.f32 %v437_v53, 0.0  ;;  %v440_v56 = vpop.f32.mrb[4].mxu0  ;;  %v464_v57 = vpop.f32.mrb[4].mxu1  ;;  %v486_v34 = vmax.f32 %v461_v17, 0.0 }
  0xf3   : > { %v533_v59 = vmul.f32 %v499_v35, %v477_v54  ;;  %v441_v60 = vadd.f32 %v440_v56, %v303_v31  ;;  %v442_v61 = vpop.f32.mrb[5].mxu0  ;;  %v466_v62 = vpop.f32.mrb[5].mxu1  ;;  %v465_v22 = vadd.f32 %v464_v57, %v323_v63  ;;  %v541_v42 = vmul.f32 %v519_v32, %v485_v29 }
  0xf4   : > { %v534_v1 = vmul.f32 %v499_v35, %v478_v55  ;;  %v443_v2 = vadd.f32 %v442_v61, %v303_v31  ;;  %v467_v27 = vadd.f32 %v466_v62, %v323_v63  ;;  %v542_v47 = vmul.f32 %v519_v32, %v486_v34  ;;  %v529_v52 = vpop.permute.xlu1 %528 }
  0xf5   : > { %v547_v5 = vadd.f32 %v533_v59, %v531_v58  ;;  %v479_v6 = vmax.f32 %v441_v60, 0.0  ;;  %v487_v39 = vmax.f32 %v465_v22, 0.0  ;;  %v578_v58 = vlaneseq }
  0xf6   : > { %v560_v8 = vadd.f32 %v534_v1, %v532_v0  ;;  %v480_v9 = vmax.f32 %v443_v2, 0.0  ;;  %v446_v10 = vpop.f32.mrb[6].mxu0  ;;  %v470_v11 = vpop.f32.mrb[6].mxu1  ;;  %v488_v40 = vmax.f32 %v467_v27, 0.0 }
  0xf7   : > { %v535_v13 = vmul.f32 %v504_v37, %v479_v6  ;;  %v447_v14 = vadd.f32 %v446_v10, %v308_v33  ;;  %v448_v15 = vpop.f32.mrb[7].mxu0  ;;  %v472_v16 = vpop.f32.mrb[7].mxu1  ;;  %v471_v31 = vadd.f32 %v470_v11, %v328_v24  ;;  %v543_v50 = vmul.f32 %v524_v46, %v487_v39 }
  0xf8   : > { %v536_v18 = vmul.f32 %v504_v37, %v480_v9  ;;  %v449_v19 = vadd.f32 %v448_v15, %v308_v33  ;;  %v473_v36 = vadd.f32 %v472_v16, %v328_v24  ;;  %v540_v33 = vmul.f32 %v514_v3, %v484_v25 }
  0xf9   : > { %v548_v21 = vadd.f32 %v547_v5, %v535_v13  ;;  %v481_v23 = vmax.f32 %v447_v14, 0.0  ;;  %v489_v44 = vmax.f32 %v471_v31, 0.0  ;;  %v544_v53 = vmul.f32 %v524_v46, %v488_v40 }
  0xfa   : > { %v561_v26 = vadd.f32 %v560_v8, %v536_v18  ;;  %v482_v28 = vmax.f32 %v449_v19, 0.0  ;;  %v490_v49 = vmax.f32 %v473_v36, 0.0  ;;  %v579_v63 = vshrl.u32 %v578_v58, 7  ;;  %v576_v8 = vpop.permute.xlu0 %575 }
  0xfb   : > { %v537_v30 = vmul.f32 %v509_v45, %v481_v23  ;;  %v769_v6 = vmov 1966171168   ;;  %vm606_vm2 = vcmp.lt.s32.totalorder %v578_v58, 256 }
  0xfc   : > { %v538_v35 = vmul.f32 %v509_v45, %v482_v28  ;;  %v545_v45 = vmul.f32 %v529_v52, %v489_v44  ;;  %v546_v56 = vmul.f32 %v529_v52, %v490_v49  ;;  %v580_v4 = vsub.s32 0, %v579_v63 }
  0xfd   : > { %v549_v37 = vadd.f32 %v548_v21, %v537_v30  ;;  %v590_v7 = vunpack.c.l.s4 %v769_v6 }
  0xfe   : > { %v562_v41 = vadd.f32 %v561_v26, %v538_v35  ;;  %v581_v12 = vrot.slane %v576_v8, %v580_v4 }
  0xff   : > { %v550_v43 = vadd.f32 %v549_v37, %v539_v38  ;;  %v591_v14 = vunpack.c.0.s8 %v590_v7 }
 0x100   : > { %v563_v48 = vadd.f32 %v562_v41, %v540_v33 }
 0x101   : > { %v551_v51 = vadd.f32 %v550_v43, %v541_v42  ;;  %v594_v19 = vsub.s32 %v591_v14, %v579_v63 }
 0x102   : > { %v564_v54 = vadd.f32 %v563_v48, %v542_v47 }
 0x103   : > { %v552_v55 = vadd.f32 %v551_v51, %v543_v50 }
 0x104   : > { %v565_v57 = vadd.f32 %v564_v54, %v544_v53 }
 0x105   : > { %v553_v59 = vadd.f32 %v552_v55, %v545_v45 }
 0x106   : > { %v566_v60 = vadd.f32 %v565_v57, %v546_v56 }
 0x107   : > { %v554_v61 = vrot.slane %v553_v59, 4 }
 0x108   : > { %v567_v62 = vrot.slane %v566_v60, 4 }
 0x109   : > { %v555_v0 = vadd.f32 %v554_v61, %v553_v59 }
 0x10a   : > { %v568_v1 = vadd.f32 %v567_v62, %v566_v60 }
 0x10b   : > { %v556_v2 = vrot.slane %v555_v0, 2 }
 0x10c   : > { %v569_v3 = vrot.slane %v568_v1, 2 }
 0x10d   : > { %v557_v5 = vadd.f32 %v556_v2, %v555_v0 }
 0x10e   : > { %v570_v9 = vadd.f32 %v569_v3, %v568_v1 }
 0x10f   : > { %v558_v10 = vrot.slane %v557_v5, 1 }
 0x110   : > { %v571_v11 = vrot.slane %v570_v9, 1 }
 0x111   : > { %v559_v13 = vadd.f32 %v558_v10, %v557_v5 }
 0x112   : > { %v572_v15 = vadd.f32 %v571_v11, %v570_v9 }
 0x113   : > { %v582_v16 = vadd.f32 %v581_v12, %v559_v13 }
 0x114   : > { %v583_v17 = vadd.f32 %v581_v12, %v572_v15 }
 0x115   : > { %v584_v18 = vmax.f32 %v582_v16, 0.0 }
 0x116   : > { %v585_v20 = vmax.f32 %v583_v17, 0.0 }
 0x118   : > { %v588_v21 = vcombine.low %v584_v18, %v585_v20 }
 0x11a   : > { %v595_v22 = vrot.slane %v588_v21, %v594_v19 }
 0x11c   : > { %v602_v23 = vrot.slane %v595_v22, %v594_v19 }
 0x11e   : > { %608 = vst.msk [vmem:[%s262_s9] sm:$0x3] %vm606_vm2, %v602_v23 }
 0x11f PF: > { %s17_s22 = sadd.s32 1, %s765_s22   ;;  %s926_s20 = smov %s761_s21 }
 0x120   : > { %p14_p5 = scmp.ge.s32.totalorder %s17_s22, 4   ;;  %s927_s21 = smov %s929_s4 }
 0x122   :  { %16 = sbr.rel (!%p14_p5) target bundleno = 3 (0x3), region = 70 }

</bundles_post_ra>
